<compile_context>
chip_gen: v7x
topology: tpu7x:2x2x1
jax: 0.10.0
libtpu: 0.0.40
codegen_flags: <defaults>
</compile_context>

<pallas_src>
import math
import functools

import jax
import jax.numpy as jnp
from jax import lax
from jax.experimental import pallas as pl
from jax.experimental.pallas import tpu as pltpu

ATT_NUM = 32  # self.att_num in the PyTorch module


def _attention_kernel(q_ref, k_ref, v_ref,
                      wq_ref, bq_ref, wk_ref, bk_ref, wv_ref, bv_ref,
                      wo_ref, bo_ref,
                      o_ref, heads_ref,
                      *, n_head: int, mask: bool, compute_dtype):
    """One grid step processes a block of `bt` batch elements.

    Block views:
      q_ref : [bt, node_q, dq]   k_ref : [bt, node_v, dk]   v_ref : [bt, node_v, dv]
      wq_ref: [dq, H*32] (1/sqrt(32) pre-folded)  bq_ref: [1, H*32]  (same for K/V)
      wo_ref: [H*32, out_dim]                     bo_ref: [1, out_dim]
      o_ref : [bt, 1, node_q*out_dim]   (lane-dense output block)
      heads_ref (VMEM scratch): [bt*node_q, H*32] packed per-head outputs
    """
    bt, node_q, dq = q_ref.shape
    _, node_v, dk = k_ref.shape
    dv = v_ref.shape[2]
    out_dim = wo_ref.shape[1]

    cd = compute_dtype
    f32 = jnp.float32

    # Flatten (batch_block, node) -> MXU rows so each projection is ONE wide
    # matmul (all heads fused): one weight push, N = H*32 columns.
    q2 = q_ref[...].reshape(bt * node_q, dq).astype(cd)
    k2 = k_ref[...].reshape(bt * node_v, dk).astype(cd)
    v2 = v_ref[...].reshape(bt * node_v, dv).astype(cd)

    Qp = jnp.dot(q2, wq_ref[...], preferred_element_type=f32) + bq_ref[...]
    Kp = jnp.dot(k2, wk_ref[...], preferred_element_type=f32) + bk_ref[...]
    Vp = jnp.dot(v2, wv_ref[...], preferred_element_type=f32) + bv_ref[...]

    if mask:
        # Additive causal mask, hoisted out of the head loop (built once).
        row = lax.broadcasted_iota(jnp.int32, (node_q, node_v), 0)
        col = lax.broadcasted_iota(jnp.int32, (node_q, node_v), 1)
        # Large finite negative instead of -inf: robust even for a fully masked
        # row; identical softmax result for causal masks.
        neg = jnp.where(col <= row, 0.0, -1e30).astype(f32)[None]  # [1, nq, nv]

    # Score / softmax / PV per head (n_head is a small Python int). Each head's
    # output goes straight into the packed scratch so the output projection
    # below runs as ONE matmul with contraction dim H*32.
    # TODO(synk): for large node_v, tile the nv axis with an online-softmax
    # (flash-style) inner loop instead of materializing [bt, nq, nv] scores.
    for h in range(n_head):
        lo = h * ATT_NUM
        Qh = Qp[:, lo:lo + ATT_NUM].reshape(bt, node_q, ATT_NUM).astype(cd)
        Kh = Kp[:, lo:lo + ATT_NUM].reshape(bt, node_v, ATT_NUM).astype(cd)
        Vh = Vp[:, lo:lo + ATT_NUM].reshape(bt, node_v, ATT_NUM).astype(cd)

        # Scores: contract last dims directly (no explicit K transpose),
        # batched over the bt batch elements in this block.
        s = jnp.einsum('bqd,bkd->bqk', Qh, Kh,
                       preferred_element_type=f32)          # [bt, nq, nv]
        if mask:
            s = s + neg

        # Softmax in f32 with an exact divide (review correctness note).
        m = jnp.max(s, axis=-1, keepdims=True)
        e = jnp.exp(s - m)
        p = e / jnp.sum(e, axis=-1, keepdims=True)

        ho = jnp.einsum('bqk,bkd->bqd', p.astype(cd), Vh,
                        preferred_element_type=f32)          # [bt, nq, 32]
        heads_ref[:, lo:lo + ATT_NUM] = (
            ho.reshape(bt * node_q, ATT_NUM).astype(heads_ref.dtype))

    # Output projection fused across heads: K = H*32 in a single MXU matmul.
    out = jnp.dot(heads_ref[...].astype(cd), wo_ref[...],
                  preferred_element_type=f32) + bo_ref[...]  # [bt*nq, out_dim]
    out3 = out.reshape(bt, node_q, out_dim)

    # Lane-dense store: o_ref's minor dim is node_q*out_dim, so the block and
    # its writeback DMA are dense; the host-side reshape back is free.
    for q in range(node_q):
        o_ref[:, :, q * out_dim:(q + 1) * out_dim] = (
            out3[:, q:q + 1, :].astype(o_ref.dtype))


def _device_kind() -> str:
    try:
        return jax.devices()[0].device_kind.lower()
    except Exception:
        return ""


def _num_tensorcores(kind: str) -> int:
    # v7x has 2 TensorCores per chip (grid steps can shard across them);
    # v5e / v6e have a single TC, so extra grid steps are pure serial overhead.
    return 2 if "v7" in kind else 1


def _vmem_bytes_estimate(bt, node_q, node_v, dq, dk, dv, att_dim, out_dim,
                         act_bytes):
    f32b = 4
    blocks = 2 * act_bytes * bt * (node_q * dq + node_v * (dk + dv))  # dbl-buffered inputs
    blocks += 2 * act_bytes * bt * node_q * out_dim                   # dbl-buffered output
    weights = 2 * act_bytes * ((dq + dk + dv) * att_dim + 3 * att_dim
                               + att_dim * out_dim + out_dim)
    scratch = act_bytes * bt * node_q * att_dim
    live = f32b * bt * (3 * max(node_q, node_v) * att_dim   # Qp / Kp / Vp
                        + 2 * node_q * node_v               # scores / exp
                        + node_q * att_dim                  # head outputs
                        + node_q * out_dim)                 # projected output
    return blocks + weights + scratch + live


def _pick_batch_block(b, node_q, node_v, dq, dk, dv, att_dim, out_dim,
                      act_bytes, num_tc, row_target=512, vmem_budget=12 << 20):
    """Largest batch block (divisor of b) such that:
       * projection matmuls get up to `row_target` rows per grid step,
       * the per-step VMEM footprint stays inside a conservative budget,
       * >=2 grid steps remain ONLY on multi-TensorCore chips (v7x)."""
    best = 1
    for d in range(1, b + 1):
        if b % d:
            continue
        if d > 1 and d * node_q > row_target:
            continue
        if num_tc >= 2 and b >= num_tc and (b // d) < num_tc:
            continue
        if _vmem_bytes_estimate(d, node_q, node_v, dq, dk, dv, att_dim,
                                out_dim, act_bytes) > vmem_budget:
            continue
        best = max(best, d)
    return best


def my_attention_pallas(query, key, value, params, *, n_head: int,
                        mask: bool = False, compute_dtype=None,
                        batch_block=None):
    """query: [B, node_q, dq], key: [B, node_v, dk], value: [B, node_v, dv]."""
    # TODO(synk): the PyTorch 2-D input branch (unsqueeze+repeat over batch) is
    # not implemented; this wrapper expects 3-D [B, node, dim] inputs.
    b, node_q, dq = query.shape
    _, node_v, dk = key.shape
    dv = value.shape[2]
    att_dim = n_head * ATT_NUM
    out_dim = params["wo"].shape[1]
    out_dtype = query.dtype

    kind = _device_kind()
    if compute_dtype is None:
        # bf16 is the native MXU path on v6e/v7x; on v5e the VPU/EUP have no
        # bf16, so keep f32 by default (the kernel is overhead-bound there).
        compute_dtype = jnp.bfloat16 if ("v6" in kind or "v7" in kind) else jnp.float32
    cd = compute_dtype
    f32 = jnp.float32
    act_bytes = jnp.dtype(cd).itemsize

    num_tc = _num_tensorcores(kind)
    bt = (_pick_batch_block(b, node_q, node_v, dq, dk, dv, att_dim, out_dim,
                            act_bytes, num_tc)
          if batch_block is None else batch_block)
    assert b % bt == 0, "batch_block must divide batch"
    grid = (b // bt,)

    inv_sqrt_d = 1.0 / math.sqrt(ATT_NUM)

    # Host-side weight prep (free): fold 1/sqrt(att_num) into the Q projection;
    # keep weights UNSPLIT so projection / output-projection matmuls are wide
    # (N = H*32, K = H*32). Biases stay f32 (added after f32 accumulation).
    wq = (params["wq"] * inv_sqrt_d).astype(cd)
    bq = (params["bq"] * inv_sqrt_d).astype(f32).reshape(1, att_dim)
    wk = params["wk"].astype(cd)
    bk = params["bk"].astype(f32).reshape(1, att_dim)
    wv = params["wv"].astype(cd)
    bv = params["bv"].astype(f32).reshape(1, att_dim)
    wo = params["wo"].astype(cd)
    bo = params["bo"].astype(f32).reshape(1, out_dim)

    q = query.astype(cd)
    k = key.astype(cd)
    v = value.astype(cd)

    def const_spec(arr):  # full-array block, same (constant) index every step
        nd = arr.ndim
        return pl.BlockSpec(arr.shape, lambda i, _nd=nd: (0,) * _nd)

    # Advisory cost estimate so XLA schedules the custom call sensibly.
    flops = 2 * b * ((node_q * dq + node_v * dk + node_v * dv) * att_dim
                     + 2 * n_head * node_q * node_v * ATT_NUM
                     + node_q * att_dim * out_dim)
    transcendentals = b * n_head * node_q * node_v
    bytes_accessed = int(sum(int(x.size) * x.dtype.itemsize
                             for x in (q, k, v, wq, bq, wk, bk, wv, bv, wo, bo))
                         + b * node_q * out_dim * jnp.dtype(out_dtype).itemsize)

    kernel = functools.partial(_attention_kernel, n_head=n_head, mask=mask,
                               compute_dtype=cd)
    out_flat = pl.pallas_call(
        kernel,
        # Lane-dense output layout; reshaped back to [b, node_q, out_dim] below.
        out_shape=jax.ShapeDtypeStruct((b, 1, node_q * out_dim), out_dtype),
        grid=grid,
        in_specs=[
            pl.BlockSpec((bt, node_q, dq), lambda i: (i, 0, 0)),
            pl.BlockSpec((bt, node_v, dk), lambda i: (i, 0, 0)),
            pl.BlockSpec((bt, node_v, dv), lambda i: (i, 0, 0)),
            const_spec(wq), const_spec(bq), const_spec(wk), const_spec(bk),
            const_spec(wv), const_spec(bv), const_spec(wo), const_spec(bo),
        ],
        out_specs=pl.BlockSpec((bt, 1, node_q * out_dim), lambda i: (i, 0, 0)),
        scratch_shapes=[pltpu.VMEM((bt * node_q, att_dim), cd)],
        compiler_params=pltpu.CompilerParams(
            dimension_semantics=("parallel",),
            vmem_limit_bytes=32 * 1024 * 1024),
        cost_estimate=pl.CostEstimate(flops=flops,
                                      transcendentals=transcendentals,
                                      bytes_accessed=bytes_accessed),
    )(q, k, v, wq, bq, wk, bk, wv, bv, wo, bo)
    return out_flat.reshape(b, node_q, out_dim)


def my_attention_ref(query, key, value, params, *, n_head: int, mask: bool = False):
    """Pure-JAX reference mirroring the PyTorch forward exactly."""
    b = query.shape[0]
    att_dim = n_head * ATT_NUM
    Q = query @ params["wq"] + params["bq"]
    K = key @ params["wk"] + params["bk"]
    V = value @ params["wv"] + params["bv"]

    def split_heads(x):
        B, N, _ = x.shape
        x = x.reshape(B, N, n_head, ATT_NUM)
        return jnp.transpose(x, (2, 0, 1, 3)).reshape(B * n_head, N, ATT_NUM)

    Qh, Kh, Vh = split_heads(Q), split_heads(K), split_heads(V)
    s = jnp.einsum("bmd,bnd->bmn", Qh, Kh)
    if mask:
        nq, nv = s.shape[-2], s.shape[-1]
        rowi = jnp.arange(nq)[:, None]
        coli = jnp.arange(nv)[None, :]
        s = jnp.where(coli <= rowi, s, -jnp.inf)
    s = s / math.sqrt(ATT_NUM)
    p = jax.nn.softmax(s, axis=-1)
    o = jnp.einsum("bmn,bnd->bmd", p, Vh)
    nq = query.shape[1]
    o = o.reshape(n_head, b, nq, ATT_NUM)
    o = jnp.transpose(o, (1, 2, 0, 3)).reshape(b, nq, att_dim)
    return o @ params["wo"] + params["bo"]


def init_params(key, dq, dk, dv, out_dim, n_head):
    """Deterministic init matching nn.Linear shapes (stored as [in, out])."""
    att_dim = n_head * ATT_NUM
    ks = jax.random.split(key, 8)

    def lin(kw, kb, fan_in, fan_out):
        bound = 1.0 / math.sqrt(fan_in)
        w = jax.random.uniform(kw, (fan_in, fan_out), jnp.float32, -bound, bound)
        bvec = jax.random.uniform(kb, (fan_out,), jnp.float32, -bound, bound)
        return w, bvec

    wq, bq = lin(ks[0], ks[1], dq, att_dim)
    wk, bk = lin(ks[2], ks[3], dk, att_dim)
    wv, bv = lin(ks[4], ks[5], dv, att_dim)
    wo, bo = lin(ks[6], ks[7], att_dim, out_dim)
    return dict(wq=wq, bq=bq, wk=wk, bk=bk, wv=wv, bv=bv, wo=wo, bo=bo)


if __name__ == "__main__":
    # Small shapes consistent with my_attention(node_q, node_v, dq, dk, dv, out_dim)
    B, NODE_Q, NODE_V = 2, 8, 16
    DQ, DK, DV, OUT_DIM = 16, 16, 8, 48
    N_HEAD = 2

    root = jax.random.PRNGKey(0)
    kq, kk, kv, kp = jax.random.split(root, 4)
    query = jax.random.normal(kq, (B, NODE_Q, DQ), jnp.float32)
    key = jax.random.normal(kk, (B, NODE_V, DK), jnp.float32)
    value = jax.random.normal(kv, (B, NODE_V, DV), jnp.float32)
    params = init_params(kp, DQ, DK, DV, OUT_DIM, N_HEAD)

    ref = my_attention_ref(query, key, value, params, n_head=N_HEAD, mask=False)

    # f32 compute path (exact softmax divide -> tight tolerance).
    out = my_attention_pallas(query, key, value, params, n_head=N_HEAD,
                              mask=False, compute_dtype=jnp.float32)
    out = jax.block_until_ready(out)
    assert out.shape == (B, NODE_Q, OUT_DIM)
    assert jnp.allclose(out, ref, atol=1e-3, rtol=1e-3), "f32 mismatch vs reference"

    # bf16 MXU-input path (v6e/v7x fast path), f32 accumulation.
    out_bf16 = my_attention_pallas(query, key, value, params, n_head=N_HEAD,
                                   mask=False, compute_dtype=jnp.bfloat16)
    out_bf16 = jax.block_until_ready(out_bf16)
    assert jnp.allclose(out_bf16, ref, atol=1e-1, rtol=1e-1), "bf16 mismatch vs reference"

    # Masked (causal) variant with square node dims, exercising the mask path.
    B2, N2 = 2, 16
    q2 = jax.random.normal(jax.random.PRNGKey(1), (B2, N2, DQ), jnp.float32)
    k2 = jax.random.normal(jax.random.PRNGKey(2), (B2, N2, DK), jnp.float32)
    v2 = jax.random.normal(jax.random.PRNGKey(3), (B2, N2, DV), jnp.float32)
    out_m = my_attention_pallas(q2, k2, v2, params, n_head=N_HEAD, mask=True,
                                compute_dtype=jnp.float32)
    out_m = jax.block_until_ready(out_m)
    ref_m = my_attention_ref(q2, k2, v2, params, n_head=N_HEAD, mask=True)
    assert jnp.allclose(out_m, ref_m, atol=1e-3, rtol=1e-3), "masked mismatch vs reference"

    print("KERNEL_OK")
</pallas_src>

<mosaic_0001>
module attributes {stable_mosaic.version = 11 : i64} {
  func.func @_attention_kernel(%arg0: i32, %arg1: memref<2x8x16xf32, #tpu.memory_space<vmem>>, %arg2: memref<2x16x16xf32, #tpu.memory_space<vmem>>, %arg3: memref<2x16x8xf32, #tpu.memory_space<vmem>>, %arg4: memref<16x64xf32, #tpu.memory_space<vmem>>, %arg5: memref<1x64xf32, #tpu.memory_space<vmem>>, %arg6: memref<16x64xf32, #tpu.memory_space<vmem>>, %arg7: memref<1x64xf32, #tpu.memory_space<vmem>>, %arg8: memref<8x64xf32, #tpu.memory_space<vmem>>, %arg9: memref<1x64xf32, #tpu.memory_space<vmem>>, %arg10: memref<64x48xf32, #tpu.memory_space<vmem>>, %arg11: memref<1x48xf32, #tpu.memory_space<vmem>>, %arg12: memref<2x1x384xf32, #tpu.memory_space<vmem>>, %arg13: memref<16x64xf32, #tpu.memory_space<vmem>>) attributes {dimension_semantics = [#tpu.dimension_semantics<parallel>], iteration_bounds = array<i64: 1>, scalar_prefetch = 0 : i64, scratch_operands = 1 : i64, tpu.core_type = #tpu.core_type<tc>, window_params = [{transform_indices = @transform_0, window_bounds = array<i64: 2, 8, 16>}, {transform_indices = @transform_1, window_bounds = array<i64: 2, 16, 16>}, {transform_indices = @transform_2, window_bounds = array<i64: 2, 16, 8>}, {pipeline_mode = #tpu.pipeline_mode<synchronous>, transform_indices = @transform_3, window_bounds = array<i64: 16, 64>}, {pipeline_mode = #tpu.pipeline_mode<synchronous>, transform_indices = @transform_4, window_bounds = array<i64: 1, 64>}, {pipeline_mode = #tpu.pipeline_mode<synchronous>, transform_indices = @transform_5, window_bounds = array<i64: 16, 64>}, {pipeline_mode = #tpu.pipeline_mode<synchronous>, transform_indices = @transform_6, window_bounds = array<i64: 1, 64>}, {pipeline_mode = #tpu.pipeline_mode<synchronous>, transform_indices = @transform_7, window_bounds = array<i64: 8, 64>}, {pipeline_mode = #tpu.pipeline_mode<synchronous>, transform_indices = @transform_8, window_bounds = array<i64: 1, 64>}, {pipeline_mode = #tpu.pipeline_mode<synchronous>, transform_indices = @transform_9, window_bounds = array<i64: 64, 48>}, {pipeline_mode = #tpu.pipeline_mode<synchronous>, transform_indices = @transform_10, window_bounds = array<i64: 1, 48>}, {transform_indices = @transform_11, window_bounds = array<i64: 2, 1, 384>}]} {
    %c0 = arith.constant 0 : index
    %c0_0 = arith.constant 0 : index
    %c0_1 = arith.constant 0 : index
    %0 = vector.load %arg1[%c0, %c0_0, %c0_1] : memref<2x8x16xf32, #tpu.memory_space<vmem>>, vector<2x8x16xf32>
    %1 = vector.shape_cast %0 : vector<2x8x16xf32> to vector<16x16xf32>
    %c0_2 = arith.constant 0 : index
    %c0_3 = arith.constant 0 : index
    %c0_4 = arith.constant 0 : index
    %2 = vector.load %arg2[%c0_2, %c0_3, %c0_4] : memref<2x16x16xf32, #tpu.memory_space<vmem>>, vector<2x16x16xf32>
    %3 = vector.shape_cast %2 : vector<2x16x16xf32> to vector<32x16xf32>
    %c0_5 = arith.constant 0 : index
    %c0_6 = arith.constant 0 : index
    %c0_7 = arith.constant 0 : index
    %4 = vector.load %arg3[%c0_5, %c0_6, %c0_7] : memref<2x16x8xf32, #tpu.memory_space<vmem>>, vector<2x16x8xf32>
    %5 = vector.shape_cast %4 : vector<2x16x8xf32> to vector<32x8xf32>
    %c0_8 = arith.constant 0 : index
    %c0_9 = arith.constant 0 : index
    %6 = vector.load %arg4[%c0_8, %c0_9] : memref<16x64xf32, #tpu.memory_space<vmem>>, vector<16x64xf32>
    %cst = arith.constant dense<0.000000e+00> : vector<16x64xf32>
    %7 = tpu.matmul %1, %6, %cst {dimension_numbers = #tpu.dot_dimension_numbers<[1], [0], [0], [1], [0, 0, 1, 1], [], []>} : vector<16x16xf32>, vector<16x64xf32>, vector<16x64xf32> -> vector<16x64xf32>
    %c0_10 = arith.constant 0 : index
    %c0_11 = arith.constant 0 : index
    %8 = vector.load %arg5[%c0_10, %c0_11] : memref<1x64xf32, #tpu.memory_space<vmem>>, vector<1x64xf32>
    %9 = vector.broadcast %8 : vector<1x64xf32> to vector<16x64xf32>
    %10 = arith.addf %7, %9 : vector<16x64xf32>
    %c0_12 = arith.constant 0 : index
    %c0_13 = arith.constant 0 : index
    %11 = vector.load %arg6[%c0_12, %c0_13] : memref<16x64xf32, #tpu.memory_space<vmem>>, vector<16x64xf32>
    %cst_14 = arith.constant dense<0.000000e+00> : vector<32x64xf32>
    %12 = tpu.matmul %3, %11, %cst_14 {dimension_numbers = #tpu.dot_dimension_numbers<[1], [0], [0], [1], [0, 0, 1, 1], [], []>} : vector<32x16xf32>, vector<16x64xf32>, vector<32x64xf32> -> vector<32x64xf32>
    %c0_15 = arith.constant 0 : index
    %c0_16 = arith.constant 0 : index
    %13 = vector.load %arg7[%c0_15, %c0_16] : memref<1x64xf32, #tpu.memory_space<vmem>>, vector<1x64xf32>
    %14 = vector.broadcast %13 : vector<1x64xf32> to vector<32x64xf32>
    %15 = arith.addf %12, %14 : vector<32x64xf32>
    %c0_17 = arith.constant 0 : index
    %c0_18 = arith.constant 0 : index
    %16 = vector.load %arg8[%c0_17, %c0_18] : memref<8x64xf32, #tpu.memory_space<vmem>>, vector<8x64xf32>
    %cst_19 = arith.constant dense<0.000000e+00> : vector<32x64xf32>
    %17 = tpu.matmul %5, %16, %cst_19 {dimension_numbers = #tpu.dot_dimension_numbers<[1], [0], [0], [1], [0, 0, 1, 1], [], []>} : vector<32x8xf32>, vector<8x64xf32>, vector<32x64xf32> -> vector<32x64xf32>
    %c0_20 = arith.constant 0 : index
    %c0_21 = arith.constant 0 : index
    %18 = vector.load %arg9[%c0_20, %c0_21] : memref<1x64xf32, #tpu.memory_space<vmem>>, vector<1x64xf32>
    %19 = vector.broadcast %18 : vector<1x64xf32> to vector<32x64xf32>
    %20 = arith.addf %17, %19 : vector<32x64xf32>
    %21 = vector.extract_strided_slice %10 {offsets = [0, 0], sizes = [16, 32], strides = [1, 1]} : vector<16x64xf32> to vector<16x32xf32>
    %22 = vector.shape_cast %21 : vector<16x32xf32> to vector<2x8x32xf32>
    %23 = vector.extract_strided_slice %15 {offsets = [0, 0], sizes = [32, 32], strides = [1, 1]} : vector<32x64xf32> to vector<32x32xf32>
    %24 = vector.shape_cast %23 : vector<32x32xf32> to vector<2x16x32xf32>
    %25 = vector.extract_strided_slice %20 {offsets = [0, 0], sizes = [32, 32], strides = [1, 1]} : vector<32x64xf32> to vector<32x32xf32>
    %26 = vector.shape_cast %25 : vector<32x32xf32> to vector<2x16x32xf32>
    "tpu.trace_start"() <{level = 10 : i32, message = "bqd,bkd->bqk"}> : () -> ()
    %cst_22 = arith.constant dense<0.000000e+00> : vector<2x8x16xf32>
    %27 = tpu.matmul %22, %24, %cst_22 {dimension_numbers = #tpu.dot_dimension_numbers<[2], [2], [1], [1], [0, 0, 0, 1, 1, 1], [0], [0]>} : vector<2x8x32xf32>, vector<2x16x32xf32>, vector<2x8x16xf32> -> vector<2x8x16xf32>
    "tpu.trace_stop"() : () -> ()
    %cst_23 = arith.constant dense<0xFF800000> : vector<2x8xf32>
    %28 = vector.multi_reduction <maximumf>, %27, %cst_23 [2] : vector<2x8x16xf32> to vector<2x8xf32>
    %29 = vector.shape_cast %28 : vector<2x8xf32> to vector<2x8x1xf32>
    %30 = vector.broadcast %29 : vector<2x8x1xf32> to vector<2x8x16xf32>
    %31 = arith.subf %27, %30 : vector<2x8x16xf32>
    %32 = math.exp %31 : vector<2x8x16xf32>
    %cst_24 = arith.constant dense<0.000000e+00> : vector<2x8xf32>
    %33 = vector.multi_reduction <add>, %32, %cst_24 [2] : vector<2x8x16xf32> to vector<2x8xf32>
    %34 = vector.shape_cast %33 : vector<2x8xf32> to vector<2x8x1xf32>
    %35 = vector.broadcast %34 : vector<2x8x1xf32> to vector<2x8x16xf32>
    %36 = arith.divf %32, %35 : vector<2x8x16xf32>
    "tpu.trace_start"() <{level = 10 : i32, message = "bqk,bkd->bqd"}> : () -> ()
    %cst_25 = arith.constant dense<0.000000e+00> : vector<2x8x32xf32>
    %37 = tpu.matmul %36, %26, %cst_25 {dimension_numbers = #tpu.dot_dimension_numbers<[2], [1], [1], [2], [0, 0, 0, 1, 1, 2], [0], [0]>} : vector<2x8x16xf32>, vector<2x16x32xf32>, vector<2x8x32xf32> -> vector<2x8x32xf32>
    "tpu.trace_stop"() : () -> ()
    %38 = vector.shape_cast %37 : vector<2x8x32xf32> to vector<16x32xf32>
    %c0_26 = arith.constant 0 : index
    %c0_27 = arith.constant 0 : index
    %39 = vector.load %arg13[%c0_26, %c0_27] : memref<16x64xf32, #tpu.memory_space<vmem>>, vector<16x32xf32>
    tpu.vector_store %arg13[%c0_26, %c0_27], %38 {strides = array<i32>} : memref<16x64xf32, #tpu.memory_space<vmem>>, vector<16x32xf32>,
    %40 = vector.extract_strided_slice %10 {offsets = [0, 32], sizes = [16, 32], strides = [1, 1]} : vector<16x64xf32> to vector<16x32xf32>
    %41 = vector.shape_cast %40 : vector<16x32xf32> to vector<2x8x32xf32>
    %42 = vector.extract_strided_slice %15 {offsets = [0, 32], sizes = [32, 32], strides = [1, 1]} : vector<32x64xf32> to vector<32x32xf32>
    %43 = vector.shape_cast %42 : vector<32x32xf32> to vector<2x16x32xf32>
    %44 = vector.extract_strided_slice %20 {offsets = [0, 32], sizes = [32, 32], strides = [1, 1]} : vector<32x64xf32> to vector<32x32xf32>
    %45 = vector.shape_cast %44 : vector<32x32xf32> to vector<2x16x32xf32>
    "tpu.trace_start"() <{level = 10 : i32, message = "bqd,bkd->bqk"}> : () -> ()
    %cst_28 = arith.constant dense<0.000000e+00> : vector<2x8x16xf32>
    %46 = tpu.matmul %41, %43, %cst_28 {dimension_numbers = #tpu.dot_dimension_numbers<[2], [2], [1], [1], [0, 0, 0, 1, 1, 1], [0], [0]>} : vector<2x8x32xf32>, vector<2x16x32xf32>, vector<2x8x16xf32> -> vector<2x8x16xf32>
    "tpu.trace_stop"() : () -> ()
    %cst_29 = arith.constant dense<0xFF800000> : vector<2x8xf32>
    %47 = vector.multi_reduction <maximumf>, %46, %cst_29 [2] : vector<2x8x16xf32> to vector<2x8xf32>
    %48 = vector.shape_cast %47 : vector<2x8xf32> to vector<2x8x1xf32>
    %49 = vector.broadcast %48 : vector<2x8x1xf32> to vector<2x8x16xf32>
    %50 = arith.subf %46, %49 : vector<2x8x16xf32>
    %51 = math.exp %50 : vector<2x8x16xf32>
    %cst_30 = arith.constant dense<0.000000e+00> : vector<2x8xf32>
    %52 = vector.multi_reduction <add>, %51, %cst_30 [2] : vector<2x8x16xf32> to vector<2x8xf32>
    %53 = vector.shape_cast %52 : vector<2x8xf32> to vector<2x8x1xf32>
    %54 = vector.broadcast %53 : vector<2x8x1xf32> to vector<2x8x16xf32>
    %55 = arith.divf %51, %54 : vector<2x8x16xf32>
    "tpu.trace_start"() <{level = 10 : i32, message = "bqk,bkd->bqd"}> : () -> ()
    %cst_31 = arith.constant dense<0.000000e+00> : vector<2x8x32xf32>
    %56 = tpu.matmul %55, %45, %cst_31 {dimension_numbers = #tpu.dot_dimension_numbers<[2], [1], [1], [2], [0, 0, 0, 1, 1, 2], [0], [0]>} : vector<2x8x16xf32>, vector<2x16x32xf32>, vector<2x8x32xf32> -> vector<2x8x32xf32>
    "tpu.trace_stop"() : () -> ()
    %57 = vector.shape_cast %56 : vector<2x8x32xf32> to vector<16x32xf32>
    %c0_32 = arith.constant 0 : index
    %c32 = arith.constant 32 : index
    %58 = vector.load %arg13[%c0_32, %c32] : memref<16x64xf32, #tpu.memory_space<vmem>>, vector<16x32xf32>
    tpu.vector_store %arg13[%c0_32, %c32], %57 {strides = array<i32>} : memref<16x64xf32, #tpu.memory_space<vmem>>, vector<16x32xf32>,
    %c0_33 = arith.constant 0 : index
    %c0_34 = arith.constant 0 : index
    %59 = vector.load %arg13[%c0_33, %c0_34] : memref<16x64xf32, #tpu.memory_space<vmem>>, vector<16x64xf32>
    %c0_35 = arith.constant 0 : index
    %c0_36 = arith.constant 0 : index
    %60 = vector.load %arg10[%c0_35, %c0_36] : memref<64x48xf32, #tpu.memory_space<vmem>>, vector<64x48xf32>
    %cst_37 = arith.constant dense<0.000000e+00> : vector<16x48xf32>
    %61 = tpu.matmul %59, %60, %cst_37 {dimension_numbers = #tpu.dot_dimension_numbers<[1], [0], [0], [1], [0, 0, 1, 1], [], []>} : vector<16x64xf32>, vector<64x48xf32>, vector<16x48xf32> -> vector<16x48xf32>
    %c0_38 = arith.constant 0 : index
    %c0_39 = arith.constant 0 : index
    %62 = vector.load %arg11[%c0_38, %c0_39] : memref<1x48xf32, #tpu.memory_space<vmem>>, vector<1x48xf32>
    %63 = vector.broadcast %62 : vector<1x48xf32> to vector<16x48xf32>
    %64 = arith.addf %61, %63 : vector<16x48xf32>
    %65 = vector.shape_cast %64 : vector<16x48xf32> to vector<2x8x48xf32>
    %66 = vector.extract_strided_slice %65 {offsets = [0, 0, 0], sizes = [2, 1, 48], strides = [1, 1, 1]} : vector<2x8x48xf32> to vector<2x1x48xf32>
    %c0_40 = arith.constant 0 : index
    %c0_41 = arith.constant 0 : index
    %c0_42 = arith.constant 0 : index
    %67 = vector.load %arg12[%c0_40, %c0_41, %c0_42] : memref<2x1x384xf32, #tpu.memory_space<vmem>>, vector<2x1x48xf32>
    tpu.vector_store %arg12[%c0_40, %c0_41, %c0_42], %66 {strides = array<i32>} : memref<2x1x384xf32, #tpu.memory_space<vmem>>, vector<2x1x48xf32>,
    %68 = vector.extract_strided_slice %65 {offsets = [0, 1, 0], sizes = [2, 1, 48], strides = [1, 1, 1]} : vector<2x8x48xf32> to vector<2x1x48xf32>
    %c0_43 = arith.constant 0 : index
    %c0_44 = arith.constant 0 : index
    %c48 = arith.constant 48 : index
    %69 = vector.load %arg12[%c0_43, %c0_44, %c48] : memref<2x1x384xf32, #tpu.memory_space<vmem>>, vector<2x1x48xf32>
    tpu.vector_store %arg12[%c0_43, %c0_44, %c48], %68 {strides = array<i32>} : memref<2x1x384xf32, #tpu.memory_space<vmem>>, vector<2x1x48xf32>,
    %70 = vector.extract_strided_slice %65 {offsets = [0, 2, 0], sizes = [2, 1, 48], strides = [1, 1, 1]} : vector<2x8x48xf32> to vector<2x1x48xf32>
    %c0_45 = arith.constant 0 : index
    %c0_46 = arith.constant 0 : index
    %c96 = arith.constant 96 : index
    %71 = vector.load %arg12[%c0_45, %c0_46, %c96] : memref<2x1x384xf32, #tpu.memory_space<vmem>>, vector<2x1x48xf32>
    tpu.vector_store %arg12[%c0_45, %c0_46, %c96], %70 {strides = array<i32>} : memref<2x1x384xf32, #tpu.memory_space<vmem>>, vector<2x1x48xf32>,
    %72 = vector.extract_strided_slice %65 {offsets = [0, 3, 0], sizes = [2, 1, 48], strides = [1, 1, 1]} : vector<2x8x48xf32> to vector<2x1x48xf32>
    %c0_47 = arith.constant 0 : index
    %c0_48 = arith.constant 0 : index
    %c144 = arith.constant 144 : index
    %73 = vector.load %arg12[%c0_47, %c0_48, %c144] : memref<2x1x384xf32, #tpu.memory_space<vmem>>, vector<2x1x48xf32>
    tpu.vector_store %arg12[%c0_47, %c0_48, %c144], %72 {strides = array<i32>} : memref<2x1x384xf32, #tpu.memory_space<vmem>>, vector<2x1x48xf32>,
    %74 = vector.extract_strided_slice %65 {offsets = [0, 4, 0], sizes = [2, 1, 48], strides = [1, 1, 1]} : vector<2x8x48xf32> to vector<2x1x48xf32>
    %c0_49 = arith.constant 0 : index
    %c0_50 = arith.constant 0 : index
    %c192 = arith.constant 192 : index
    %75 = vector.load %arg12[%c0_49, %c0_50, %c192] : memref<2x1x384xf32, #tpu.memory_space<vmem>>, vector<2x1x48xf32>
    tpu.vector_store %arg12[%c0_49, %c0_50, %c192], %74 {strides = array<i32>} : memref<2x1x384xf32, #tpu.memory_space<vmem>>, vector<2x1x48xf32>,
    %76 = vector.extract_strided_slice %65 {offsets = [0, 5, 0], sizes = [2, 1, 48], strides = [1, 1, 1]} : vector<2x8x48xf32> to vector<2x1x48xf32>
    %c0_51 = arith.constant 0 : index
    %c0_52 = arith.constant 0 : index
    %c240 = arith.constant 240 : index
    %77 = vector.load %arg12[%c0_51, %c0_52, %c240] : memref<2x1x384xf32, #tpu.memory_space<vmem>>, vector<2x1x48xf32>
    tpu.vector_store %arg12[%c0_51, %c0_52, %c240], %76 {strides = array<i32>} : memref<2x1x384xf32, #tpu.memory_space<vmem>>, vector<2x1x48xf32>,
    %78 = vector.extract_strided_slice %65 {offsets = [0, 6, 0], sizes = [2, 1, 48], strides = [1, 1, 1]} : vector<2x8x48xf32> to vector<2x1x48xf32>
    %c0_53 = arith.constant 0 : index
    %c0_54 = arith.constant 0 : index
    %c288 = arith.constant 288 : index
    %79 = vector.load %arg12[%c0_53, %c0_54, %c288] : memref<2x1x384xf32, #tpu.memory_space<vmem>>, vector<2x1x48xf32>
    tpu.vector_store %arg12[%c0_53, %c0_54, %c288], %78 {strides = array<i32>} : memref<2x1x384xf32, #tpu.memory_space<vmem>>, vector<2x1x48xf32>,
    %80 = vector.extract_strided_slice %65 {offsets = [0, 7, 0], sizes = [2, 1, 48], strides = [1, 1, 1]} : vector<2x8x48xf32> to vector<2x1x48xf32>
    %c0_55 = arith.constant 0 : index
    %c0_56 = arith.constant 0 : index
    %c336 = arith.constant 336 : index
    %81 = vector.load %arg12[%c0_55, %c0_56, %c336] : memref<2x1x384xf32, #tpu.memory_space<vmem>>, vector<2x1x48xf32>
    tpu.vector_store %arg12[%c0_55, %c0_56, %c336], %80 {strides = array<i32>} : memref<2x1x384xf32, #tpu.memory_space<vmem>>, vector<2x1x48xf32>,
    return
  }
  func.func @transform_0(%arg0: i32) -> (i32, i32, i32) {
    %c0_i32 = arith.constant 0 : i32
    %c0_i32_0 = arith.constant 0 : i32
    %c0_i32_1 = arith.constant 0 : i32
    return %arg0, %c0_i32, %c0_i32_0 : i32, i32, i32
  }
  func.func @transform_1(%arg0: i32) -> (i32, i32, i32) {
    %c0_i32 = arith.constant 0 : i32
    %c0_i32_0 = arith.constant 0 : i32
    %c0_i32_1 = arith.constant 0 : i32
    return %arg0, %c0_i32, %c0_i32_0 : i32, i32, i32
  }
  func.func @transform_2(%arg0: i32) -> (i32, i32, i32) {
    %c0_i32 = arith.constant 0 : i32
    %c0_i32_0 = arith.constant 0 : i32
    %c0_i32_1 = arith.constant 0 : i32
    return %arg0, %c0_i32, %c0_i32_0 : i32, i32, i32
  }
  func.func @transform_3(%arg0: i32) -> (i32, i32) {
    %c0_i32 = arith.constant 0 : i32
    %c0_i32_0 = arith.constant 0 : i32
    %c0_i32_1 = arith.constant 0 : i32
    return %c0_i32, %c0_i32_0 : i32, i32
  }
  func.func @transform_4(%arg0: i32) -> (i32, i32) {
    %c0_i32 = arith.constant 0 : i32
    %c0_i32_0 = arith.constant 0 : i32
    %c0_i32_1 = arith.constant 0 : i32
    return %c0_i32, %c0_i32_0 : i32, i32
  }
  func.func @transform_5(%arg0: i32) -> (i32, i32) {
    %c0_i32 = arith.constant 0 : i32
    %c0_i32_0 = arith.constant 0 : i32
    %c0_i32_1 = arith.constant 0 : i32
    return %c0_i32, %c0_i32_0 : i32, i32
  }
  func.func @transform_6(%arg0: i32) -> (i32, i32) {
    %c0_i32 = arith.constant 0 : i32
    %c0_i32_0 = arith.constant 0 : i32
    %c0_i32_1 = arith.constant 0 : i32
    return %c0_i32, %c0_i32_0 : i32, i32
  }
  func.func @transform_7(%arg0: i32) -> (i32, i32) {
    %c0_i32 = arith.constant 0 : i32
    %c0_i32_0 = arith.constant 0 : i32
    %c0_i32_1 = arith.constant 0 : i32
    return %c0_i32, %c0_i32_0 : i32, i32
  }
  func.func @transform_8(%arg0: i32) -> (i32, i32) {
    %c0_i32 = arith.constant 0 : i32
    %c0_i32_0 = arith.constant 0 : i32
    %c0_i32_1 = arith.constant 0 : i32
    return %c0_i32, %c0_i32_0 : i32, i32
  }
  func.func @transform_9(%arg0: i32) -> (i32, i32) {
    %c0_i32 = arith.constant 0 : i32
    %c0_i32_0 = arith.constant 0 : i32
    %c0_i32_1 = arith.constant 0 : i32
    return %c0_i32, %c0_i32_0 : i32, i32
  }
  func.func @transform_10(%arg0: i32) -> (i32, i32) {
    %c0_i32 = arith.constant 0 : i32
    %c0_i32_0 = arith.constant 0 : i32
    %c0_i32_1 = arith.constant 0 : i32
    return %c0_i32, %c0_i32_0 : i32, i32
  }
  func.func @transform_11(%arg0: i32) -> (i32, i32, i32) {
    %c0_i32 = arith.constant 0 : i32
    %c0_i32_0 = arith.constant 0 : i32
    %c0_i32_1 = arith.constant 0 : i32
    return %arg0, %c0_i32, %c0_i32_0 : i32, i32, i32
  }
}

</mosaic_0001>

<bundles_post_ra>
// kernel: tpu_custom_call.1
= control target key start
LH: loop header
LB: loop body
LE: loop exit
PB: predicated region body
PF: predicated region fallthrough
CT: control target
= control target key end

     0   :  { %vm58_vm0 = vcmask 130048   ;;  %s2002_s0 = inlined_call_operand.vmem [shape: f32[2,8,16], index: 0, kind: input, shape index: {}]   ;;  %s2003_s1 = inlined_call_operand.vmem [shape: f32[2,16,16], index: 1, kind: input, shape index: {}]   ;;  %s2004_s2 = inlined_call_operand.vmem [shape: f32[2,16,8], index: 2, kind: input, shape index: {}]   ;;  %s2005_s3 = inlined_call_operand.vmem [shape: f32[16,64], index: 3, kind: input, shape index: {}]   ;;  %s2006_s4 = inlined_call_operand.vmem [shape: f32[1,64], index: 4, kind: input, shape index: {}]   ;;  %s2007_s5 = inlined_call_operand.vmem [shape: f32[16,64], index: 5, kind: input, shape index: {}]   ;;  %s2008_s6 = inlined_call_operand.vmem [shape: f32[1,64], index: 6, kind: input, shape index: {}]   ;;  %s2009_s7 = inlined_call_operand.vmem [shape: f32[8,64], index: 7, kind: input, shape index: {}]   ;;  %s2010_s8 = inlined_call_operand.vmem [shape: f32[1,64], index: 8, kind: input, shape index: {}]   ;;  %s2011_s9 = inlined_call_operand.vmem [shape: f32[64,48], index: 9, kind: input, shape index: {}]   ;;  %s2012_s10 = inlined_call_operand.vmem [shape: f32[1,48], index: 10, kind: input, shape index: {}]   ;;  %s2013_s11 = inlined_call_operand.hbm [shape: f32[2,1,384], index: 11, kind: output, shape index: {}]  }
   0x1   :  { %v49_v0 = vld [vmem:[%s2005_s3] sm:$0xff]  ;;  %v50_v1 = vld [vmem:[%s2005_s3 + $0x8] sm:$0xff] }
   0x2   :  { %v39_v2 = vld [vmem:[%s2002_s0] sm:$0xff]  ;;  %v1529_v3 = vpack.c.bf16 %v50_v1, %v49_v0  ;;  %v141_v5 = vld [vmem:[%s2007_s5 + $0x8] sm:$0xff] }
   0x3   :  { %1433 = vmatprep.mubr.msk.f32.mxu0 %vm58_vm0, %v39_v2  ;;  %v140_v4 = vld [vmem:[%s2007_s5] sm:$0xff] }
   0x4   :  { %v1533_v6 = vpack.c.bf16 %v141_v5, %v140_v4  ;;  %1530 = vmatprep.subr.bf16.mxu0 %v1529_v3 }
   0x5   :  { %16 = vsyncpa [#allocation4], 0  ;;  %1532 = vmatpush3.bf16.msra.mxu0 %v1529_v3  ;;  %v40_v7 = vld [vmem:[%s2002_s0 + $0x8] sm:$0xff]  ;;  %v41_v8 = vld [vmem:[%s2003_s1] sm:$0xff]  ;;  %v1654_v13 = vmov 0.0|0.0   ;;  %vm254_vm1 = vcmask 64512  }
   0x6   :  { %1534 = vmatprep.subr.bf16.mxu0 %v1533_v6  ;;  %v42_v9 = vld [vmem:[%s2003_s1 + $0x8] sm:$0xff]  ;;  %v43_v10 = vld [vmem:[%s2003_s1 + $0x10] sm:$0xff]  ;;  %v44_v11 = vld [vmem:[%s2003_s1 + $0x18] sm:$0xff]  ;;  %1537 = vmatprep.subr.bf16.mxu1 %v1654_v13  ;;  %vm1655_vm2 = vmmov 0   ;;  %v1656_v18 = vmov 0.0   ;;  %vm352_vm3 = vcmask 261120  }
   0x7   :  { %v246_v12 = vld [vmem:[%s2009_s7] sm:$0xff]  ;;  %v46_v15 = vld [vmem:[%s2004_s2 + $0x8] sm:$0xff]  ;;  %v47_v16 = vld [vmem:[%s2004_s2 + $0x10] sm:$0xff]  ;;  %1458 = vmatprep.mubr.msk.f32.mxu1 %vm1655_vm2, %v1656_v18  ;;  %s1657_s25 = smov 96   ;;  %s1658_s19 = smov 32   ;;  %vm1037_vm5 = vcmask 523520  }
   0x8   :  { %1434 = vmatmul.mubr.msk.f32.vlgmr.msra.gmra.mrb[0].mxu0 %vm58_vm0, %v40_v7  ;;  %v45_v14 = vld [vmem:[%s2004_s2] sm:$0xff]  ;;  %v48_v17 = vld [vmem:[%s2004_s2 + $0x18] sm:$0xff]  ;;  %vm1789_vm4 = vmpackc.low %vm352_vm3, %vm352_vm3  ;;  %vm1057_vm6 = vcmask 523264   ;;  %s1661_s7 = smov 64   ;;  %s1662_s21 = smov 112   ;;  %vm1210_vm12 = vcmask 785408  }
   0x9   :  { %1536 = vmatpush3.bf16.msra.mxu0 %v1533_v6  ;;  %1440 = vmatprep.mubr.msk.f32.mxu0 %vm58_vm0, %v41_v8  ;;  %v1351_v21 = vld [vmem:[%s2008_s6] ss:$0 sm:$0xff]  ;;  %s1663_s22 = smov 16   ;;  %s1664_s23 = smov 80  }
   0xa   :  { %1446 = vmatprep.subr.mxu0 %v246_v12  ;;  %v1348_v33 = vld [vmem:[%s2006_s4] ss:$0 sm:$0xff]  ;;  %s1665_s24 = smov [#allocation3]  }
   0xb   :  { %v1356_v38 = vld [vmem:[%s2010_s8] ss:$0 sm:$0xff]  ;;  %s1337_s2 = sshll.u32 %s1665_s24, 4  ;;  %s1338_s2 = int_to_ptr.vmem [resolvable:$true] %s1337_s2 }
   0xc   :  { %1441 = vmatmul.mubr.msk.f32.vlgmr.msra.gmra.mrb[2].mxu0 %vm58_vm0, %v42_v9  ;;  %s1630_s6 = scalar_lea.vmem %s1338_s2, 96  ;;  %p1635_p1 = scmp.lt.s32.totalorder %s1338_s2, %s1338_s2 }
   0xd   :  { %1443 = vmatprep.mubr.msk.f32.mxu0 %vm58_vm0, %v43_v10  ;;  %1447 = vmatpush3.msra.mxu0 %v246_v12  ;;  %p1631_p0 = scmp.ne.s32.totalorder %s1338_s2, %s1630_s6  ;;  %p1636_p2 = scmp.lt.s32.totalorder %s1630_s6, %s1630_s6 }
   0xe   :  { %1541 = vmatprep.subr.bf16.mxu0 %v1654_v13 }
   0xf   :  { %p1637_p3 = por %p1636_p2, %p1635_p1 }
  0x10   :  { %1444 = vmatmul.mubr.msk.f32.gmra.mrb[4].mxu0 %vm58_vm0, %v44_v11 }
  0x11   :  { %1448 = vmatprep.mubr.msk.f32.mxu0 %vm254_vm1, %v45_v14  ;;  %p1638_p4 = pnand %p1637_p3, %p1631_p0 }
  0x14   :  { %1449 = vmatmul.mubr.msk.f32.vlgmr.msra.gmra.mrb[6].mxu0 %vm254_vm1, %v46_v15 }
  0x15   :  { %1451 = vmatprep.mubr.msk.f32.mxu0 %vm254_vm1, %v47_v16 }
  0x18   :  { %1452 = vmatmul.mubr.msk.f32.gmra.mrb[8].mxu0 %vm254_vm1, %v48_v17 }
  0x19   :  { %1465 = vmatprep.mubr.msk.f32.mxu0 %vm1655_vm2, %v1656_v18 }
  0xdb   :  { %v1435_v19 = vpop.f32.mrb[0].mxu0 }
  0xdc   :  { %v131_v20 = vpop.f32.mrb[1].mxu0  ;;  %v137_v37 = vadd.f32 %v1435_v19, %v1348_v33 }
  0xdd   :  { %v132_v36 = vadd.f32 %v1348_v33, %v131_v20 }
  0xdf   :  { %v1442_v22 = vpop.f32.mrb[2].mxu0 }
  0xe0   :  { %v233_v23 = vadd.f32 %v1442_v22, %v1351_v21  ;;  %v227_v24 = vpop.f32.mrb[3].mxu0 }
  0xe1   :  { %v228_v25 = vadd.f32 %v1351_v21, %v227_v24 }
  0xe3   :  { %v1594_v27 = vpack.i.bf16 %v233_v23, %v228_v25  ;;  %v1538_v28 = vpack.c.bf16 %v233_v23, %v228_v25  ;;  %v1445_v29 = vpop.f32.mrb[4].mxu0 }
  0xe4   :  { %v243_v30 = vadd.f32 %v1445_v29, %v1351_v21  ;;  %v237_v31 = vpop.f32.mrb[5].mxu0 }
  0xe5   :  { %v238_v32 = vadd.f32 %v1351_v21, %v237_v31  ;;  %1540 = vmatpush3.bf16.xpose.msk.msra.mxu1 %vm1789_vm4, %v1538_v28 }
  0xe6   :  { %1545 = vmatprep.subr.bf16.mxu1 %v1654_v13 }
  0xe7   :  { %v1542_v34 = vpack.c.bf16 %v243_v30, %v238_v32  ;;  %v1599_v35 = vpack.i.bf16 %v243_v30, %v238_v32  ;;  %v1450_v39 = vpop.f32.mrb[6].mxu0 }
  0xe8   :  { %v1813_v40 = vadd.f32 %v1450_v39, %v1356_v38  ;;  %v333_v41 = vpop.f32.mrb[7].mxu0 }
  0xe9   :  { %1600 = vrot.lane.b32.xlu1 %v1599_v35, %s1657_s25  ;;  %1544 = vmatpush3.bf16.xpose.msk.msra.mxu0 %vm1789_vm4, %v1542_v34  ;;  %v1815_v42 = vadd.f32 %v1356_v38, %v333_v41 }
  0xea   :  { %1548 = vmatprep.subr.bf16.mxu0 %v1654_v13 }
  0xeb   :  { %v1604_v43 = vpack.i.bf16 %v1813_v40, %v1815_v42  ;;  %v1546_v44 = vpack.c.bf16 %v1813_v40, %v1815_v42  ;;  %v1453_v45 = vpop.f32.mrb[8].mxu0  ;;  %v1042_v40 = vld [vmem:[%s2011_s9] sm:$0xff]  ;;  %v1043_v42 = vld [vmem:[%s2011_s9 + $0x8] sm:$0xff] }
  0xec   :  { %1459 = vmatmul.mubr.msk.f32.vlgmr.msra.gmra.mrb[0].mxu1 %vm352_vm3, %v132_v36  ;;  %v1821_v46 = vadd.f32 %v1453_v45, %v1356_v38  ;;  %v343_v47 = vpop.f32.mrb[9].mxu0 }
  0xed   :  { %681 = vrot.lane.b32.xlu1 %v132_v36, %s1657_s25  ;;  %1472 = vmatprep.mubr.msk.f32.mxu1 %vm1655_vm2, %v1656_v18  ;;  %v1823_v48 = vadd.f32 %v1356_v38, %v343_v47 }
  0xee   :  { %1547 = vmatpush3.bf16.msra.mxu1 %v1546_v44 }
  0xef   :  { %1551 = vmatprep.subr.bf16.mxu1 %v1654_v13  ;;  %v1609_v49 = vpack.i.bf16 %v1821_v46, %v1823_v48  ;;  %v1549_v50 = vpack.c.bf16 %v1821_v46, %v1823_v48 }
  0xf0   :  { %1466 = vmatmul.mubr.msk.f32.vlgmr.msra.gmra.mrb[10].mxu0 %vm352_vm3, %v137_v37 }
  0xf1   :  { %1479 = vmatprep.mubr.msk.f32.mxu0 %vm1655_vm2, %v1656_v18  ;;  %1550 = vmatpush3.bf16.msra.mxu0 %v1549_v50 }
  0xf2   :  { %1555 = vmatprep.subr.bf16.mxu0 %v1654_v13 }
 0x15b   :  { %v1601_v3 = vpop.permute.xlu1 %1600 }
 0x15c   :  { %v1603_v12 = vunpack.i.h.bf16 %v1601_v3  ;;  %v1602_v14 = vunpack.i.l.bf16 %v1601_v3 }
 0x15e   :  { %v1556_v19 = vpack.c.bf16 %v1603_v12, %v1602_v14 }
 0x15f   :  { %v682_v4 = vpop.permute.xlu1 %681 }
 0x1bf   :  { %v428_v51 = vpop.f32.mrb[0].mxu1 }
 0x1c0   :  { %v1460_v52 = vpop.f32.mrb[1].mxu1  ;;  %v511_v53 = vsel %vm58_vm0, %v428_v51, -inf }
 0x1c1   :  { %512 = vmax.xlane.f32.xlu0 %v511_v53 }
 0x1c3   :  { %v507_v54 = vpop.f32.mrb[10].mxu0 }
 0x1c4   :  { %v1467_v55 = vpop.f32.mrb[11].mxu0  ;;  %v514_v56 = vsel %vm58_vm0, %v507_v54, -inf }
 0x1c5   :  { %515 = vmax.xlane.f32.xlu0 %v514_v56  ;;  %v1044_v56 = vld [vmem:[%s2011_s9 + $0x10] sm:$0xff] }
 0x1db   :  { %1595 = vrot.lane.b32.xlu0 %v1594_v27, %s1657_s25 }
 0x24e   :  { %v513_v57 = vpop.xlane.xlu0 %512 }
 0x24f   :  { %v517_v58 = vsub.f32 %v428_v51, %v513_v57  ;;  %v1045_v57 = vld [vmem:[%s2011_s9 + $0x18] sm:$0xff] }
 0x251   :  { %v519_v59 = vmul.f32 1.442695, %v517_v58  ;;  %v1569_v58 = vpack.c.bf16 %v1045_v57, %v1044_v56 }
 0x252   :  { %v516_v60 = vpop.xlane.xlu0 %515 }
 0x253   :  { %1614 = vpow2.f32 %v519_v59  ;;  %v518_v61 = vsub.f32 %v507_v54, %v516_v60  ;;  %v1046_v59 = vld [vmem:[%s2011_s9 + $0x20] sm:$0xff]  ;;  %v1047_v60 = vld [vmem:[%s2011_s9 + $0x28] sm:$0xff] }
 0x255   :  { %v521_v62 = vmul.f32 1.442695, %v518_v61  ;;  %v1573_v61 = vpack.c.bf16 %v1047_v60, %v1046_v59 }
 0x256   :  { %v1596_v7 = vpop.permute.xlu0 %1595 }
 0x257   :  { %1616 = vpow2.f32 %v521_v62  ;;  %v1598_v8 = vunpack.i.h.bf16 %v1596_v7  ;;  %v1597_v9 = vunpack.i.l.bf16 %v1596_v7  ;;  %v1048_v62 = vld [vmem:[%s2011_s9 + $0x30] sm:$0xff] }
 0x259   :  { %v1552_v15 = vpack.c.bf16 %v1598_v8, %v1597_v9  ;;  %v1139_v9 = vlaneseq }
 0x25b   :  { %v1151_v14 = vshrl.u32 %v1139_v9, 7  ;;  %vm1141_vm7 = vcmp.lt.s32.totalorder %v1139_v9, 48  ;;  %vm1909_vm8 = vcmp.ge.s32.totalorder %v1139_v9, 48  ;;  %vm1914_vm9 = vcmp.lt.s32.totalorder %v1139_v9, 96 }
 0x25c   :  { %vm1919_vm10 = vcmp.ge.s32.totalorder %v1139_v9, 96  ;;  %vm1216_vm11 = vcmp.lt.s32.totalorder %v1139_v9, 144  ;;  %vm1199_vm13 = vmand %vm1909_vm8, %vm1914_vm9  ;;  %vm1931_vm15 = vcmp.ge.s32.totalorder %v1139_v9, 16  ;;  %vm1941_vm1 = vcmp.ge.s32.totalorder %v1139_v9, 64 }
 0x25d   :  { %v1615_v63 = vpop.eup %1614  ;;  %vm1217_vm14 = vmand %vm1919_vm10, %vm1216_vm11  ;;  %vm1969_vm8 = vcmp.ge.s32.totalorder %v1139_v9, 32  ;;  %vm1974_vm9 = vcmp.lt.s32.totalorder %v1139_v9, 80 }
 0x25e   :  { %v523_v0 = vsel %vm58_vm0, %v1615_v63, 0.0  ;;  %vm1316_vm11 = vmand %vm1969_vm8, %vm1974_vm9 }
 0x25f   :  { %524 = vadd.xlane.f32.xlu1 %v523_v0 }
 0x261   :  { %v1617_v1 = vpop.eup %1616 }
 0x262   :  { %v526_v2 = vsel %vm58_vm0, %v1617_v1, 0.0 }
 0x263   :  { %527 = vadd.xlane.f32.xlu1 %v526_v2 }
 0x274   :  { %763 = vrot.lane.b32.xlu1 %v137_v37, %s1657_s25 }
 0x2ec   :  { %v525_v5 = vpop.xlane.xlu1 %524 }
 0x2ed   :  { %1618 = vrcp.f32 %v525_v5 }
 0x2f0   :  { %v528_v6 = vpop.xlane.xlu1 %527 }
 0x2f1   :  { %1620 = vrcp.f32 %v528_v6 }
 0x2f4   :  { %v764_v20 = vpop.permute.xlu1 %763 }
 0x2f7   :  { %v1619_v10 = vpop.eup %1618 }
 0x2f8   :  { %v530_v11 = vmul.f32 %v1619_v10, %v1615_v63  ;;  %v1049_v63 = vld [vmem:[%s2011_s9 + $0x38] sm:$0xff]  ;;  %v1659_v10 = vmov 1966171168  }
 0x2f9   :  { %v1577_v0 = vpack.c.bf16 %v1049_v63, %v1048_v62 }
 0x2fa   :  { %1473 = vmatmul.mubr.msk.f32.vlgmr.msra.gmra.mrb[2].mxu1 %vm58_vm0, %v530_v11  ;;  %v1148_v11 = vunpack.c.l.s4 %v1659_v10 }
 0x2fb   :  { %v1621_v16 = vpop.eup %1620  ;;  %1554 = vmatpush3.bf16.xpose.msk.msra.mxu1 %vm1789_vm4, %v1552_v15  ;;  %1486 = vmatprep.mubr.msk.f32.mxu1 %vm1655_vm2, %v1656_v18  ;;  %v1377_v15 = vld [vmem:[%s2012_s10] ss:$0 sm:$0xff]  ;;  %s1660_s10 = smov 48  }
 0x2fc   :  { %v532_v17 = vmul.f32 %v1621_v16, %v1617_v1  ;;  %1559 = vmatprep.subr.bf16.mxu1 %v1654_v13  ;;  %v1149_v12 = vunpack.c.0.s8 %v1148_v11 }
 0x2fe   :  { %1480 = vmatmul.mubr.msk.f32.vlgmr.msra.gmra.mrb[12].mxu0 %vm58_vm0, %v532_v17  ;;  %v1152_v16 = vsub.s32 %v1149_v12, %v1151_v14 }
 0x2ff   :  { %1558 = vmatpush3.bf16.xpose.msk.msra.mxu0 %vm1789_vm4, %v1556_v19  ;;  %1493 = vmatprep.mubr.msk.f32.mxu0 %vm1655_vm2, %v1656_v18  ;;  %vm1956_vm4 = vcmp.lt.s32.totalorder %v1139_v9, 160 }
 0x300   :  { %1562 = vmatprep.subr.bf16.mxu0 %v1654_v13 }
 0x302   :  { %1487 = vmatmul.mubr.msk.f32.vlgmr.msra.gmra.mrb[4].mxu1 %vm352_vm3, %v682_v4 }
 0x303   :  { %1500 = vmatprep.mubr.msk.f32.mxu1 %vm1655_vm2, %v1656_v18 }
 0x306   :  { %1494 = vmatmul.mubr.msk.f32.vlgmr.msra.gmra.mrb[14].mxu0 %vm352_vm3, %v764_v20 }
 0x307   :  { %1507 = vmatprep.mubr.msk.f32.mxu0 %vm1655_vm2, %v1656_v18  ;;  %vm1946_vm2 = vcmp.lt.s32.totalorder %v1139_v9, 112 }
 0x3cd   :  { %v602_v21 = vpop.f32.mrb[2].mxu1 }
 0x3ce   :  { %679 = vst.msk [vmem:[#allocation2] sm:$0xff] %vm352_vm3, %v602_v21  ;;  %v1474_v22 = vpop.f32.mrb[3].mxu1 }
 0x3d1   :  { %v675_v23 = vpop.f32.mrb[12].mxu0 }
 0x3d2   :  { %680 = vst.msk [vmem:[#allocation2 + $0x8] sm:$0xff] %vm352_vm3, %v675_v23  ;;  %v1481_v24 = vpop.f32.mrb[13].mxu0  ;;  %vm1951_vm3 = vcmp.ge.s32.totalorder %v1139_v9, 112 }
 0x3d3   :  { %vm1303_vm10 = vmand %vm1951_vm3, %vm1956_vm4 }
 0x3d5   :  { %v759_v13 = vpop.f32.mrb[4].mxu1 }
 0x3d6   :  { %v1488_v25 = vpop.f32.mrb[5].mxu1  ;;  %v845_v26 = vsel %vm58_vm0, %v759_v13, -inf }
 0x3d7   :  { %846 = vmax.xlane.f32.xlu0 %v845_v26 }
 0x3d9   :  { %v841_v27 = vpop.f32.mrb[14].mxu0 }
 0x3da   :  { %v1495_v28 = vpop.f32.mrb[15].mxu0  ;;  %v848_v29 = vsel %vm58_vm0, %v841_v27, -inf }
 0x3db   :  { %849 = vmax.xlane.f32.xlu1 %v848_v29 }
 0x3ec   :  { %1610 = vrot.lane.b32.xlu1 %v1609_v49, %s1657_s25 }
 0x464   :  { %v847_v18 = vpop.xlane.xlu0 %846 }
 0x465   :  { %v851_v30 = vsub.f32 %v759_v13, %v847_v18 }
 0x467   :  { %v853_v31 = vmul.f32 1.442695, %v851_v30 }
 0x468   :  { %v850_v32 = vpop.xlane.xlu1 %849 }
 0x469   :  { %1622 = vpow2.f32 %v853_v31  ;;  %v852_v33 = vsub.f32 %v841_v27, %v850_v32 }
 0x46b   :  { %v855_v34 = vmul.f32 1.442695, %v852_v33 }
 0x46c   :  { %v1611_v35 = vpop.permute.xlu1 %1610 }
 0x46d   :  { %1624 = vpow2.f32 %v855_v34  ;;  %v1613_v36 = vunpack.i.h.bf16 %v1611_v35  ;;  %v1612_v37 = vunpack.i.l.bf16 %v1611_v35 }
 0x46f   :  { %v1563_v38 = vpack.c.bf16 %v1613_v36, %v1612_v37 }
 0x471   :  { %1564 = vmatpush3.bf16.msra.mxu0 %v1563_v38 }
 0x473   :  { %v1623_v39 = vpop.eup %1622 }
 0x474   :  { %v857_v41 = vsel %vm58_vm0, %v1623_v39, 0.0 }
 0x475   :  { %858 = vadd.xlane.f32.xlu0 %v857_v41 }
 0x477   :  { %v1625_v44 = vpop.eup %1624 }
 0x478   :  { %v860_v45 = vsel %vm58_vm0, %v1625_v44, 0.0 }
 0x479   :  { %861 = vadd.xlane.f32.xlu0 %v860_v45 }
 0x48f   :  { %1605 = vrot.lane.b32.xlu0 %v1604_v43, %s1657_s25  ;;  %v1565_v43 = vpack.c.bf16 %v1043_v42, %v1042_v40 }
 0x502   :  { %v859_v46 = vpop.xlane.xlu0 %858 }
 0x503   :  { %1626 = vrcp.f32 %v859_v46 }
 0x506   :  { %v862_v47 = vpop.xlane.xlu0 %861 }
 0x507   :  { %1628 = vrcp.f32 %v862_v47 }
 0x50a   :  { %v1606_v48 = vpop.permute.xlu0 %1605 }
 0x50b   :  { %v1608_v49 = vunpack.i.h.bf16 %v1606_v48  ;;  %v1607_v50 = vunpack.i.l.bf16 %v1606_v48 }
 0x50d   :  { %v1627_v51 = vpop.eup %1626  ;;  %v1560_v52 = vpack.c.bf16 %v1608_v49, %v1607_v50 }
 0x50e   :  { %v864_v53 = vmul.f32 %v1627_v51, %v1623_v39 }
 0x50f   :  { %1561 = vmatpush3.bf16.msra.mxu1 %v1560_v52 }
 0x510   :  { %1566 = vmatprep.subr.bf16.mxu1 %v1565_v43 }
 0x511   :  { %v1629_v54 = vpop.eup %1628 }
 0x512   :  { %v866_v55 = vmul.f32 %v1629_v54, %v1625_v44  ;;  %1501 = vmatmul.mubr.msk.f32.vlgmr.msra.gmra.mrb[6].mxu1 %vm58_vm0, %v864_v53 }
 0x513   :  { %1568 = vmatpush3.bf16.msra.mxu1 %v1565_v43 }
 0x514   :  { %1508 = vmatmul.mubr.msk.f32.vlgmr.msra.gmra.mrb[16].mxu0 %vm58_vm0, %v866_v55  ;;  %1570 = vmatprep.subr.bf16.mxu1 %v1569_v58  ;;  %vm1936_vm0 = vcmp.lt.s32.totalorder %v1139_v9, 64 }
 0x517   :  { %1572 = vmatpush3.bf16.msra.mxu1 %v1569_v58 }
 0x518   :  { %1574 = vmatprep.subr.bf16.mxu1 %v1573_v61 }
 0x51b   :  { %1576 = vmatpush3.bf16.msra.mxu1 %v1573_v61 }
 0x51c   :  { %1578 = vmatprep.subr.bf16.mxu1 %v1577_v0 }
 0x51f   :  { %1580 = vmatpush3.bf16.msra.mxu1 %v1577_v0 }
 0x5e5   :  { %v944_v1 = vpop.f32.mrb[6].mxu1 }
 0x5e6   :  { %1031 = vrot.lane.b32.xlu1 %v944_v1, %s1658_s19  ;;  %v1502_v2 = vpop.f32.mrb[7].mxu1 }
 0x5e7   :  { %v1025_v3 = vpop.f32.mrb[16].mxu0 }
 0x5e8   :  { %v1509_v4 = vpop.f32.mrb[17].mxu0 }
 0x5ea   :  { %1033 = vrot.lane.b32.xlu1 %v1025_v3, %s1658_s19 }
 0x658   :  { %v1032_v5 = vpop.permute.xlu1 %1031 }
 0x659   :  { %1038 = vst.msk [vmem:[#allocation2] sm:$0xff] %vm1037_vm5, %v1032_v5 }
 0x65c   :  { %v1034_v6 = vpop.permute.xlu1 %1033 }
 0x65d   :  { %1039 = vst.msk [vmem:[#allocation2 + $0x8] sm:$0xff] %vm1037_vm5, %v1034_v6  ;;  %vm1230_vm5 = vmand %vm1931_vm15, %vm1936_vm0 }
 0x660   :  { %v1040_v7 = vld [vmem:[#allocation2] sm:$0xff] }
 0x661   :  { %1526 = vmatprep.mubr.msk.f32.mxu1 %vm1057_vm6, %v1040_v7 }
 0x664   :  { %v1041_v8 = vld [vmem:[#allocation2 + $0x8] sm:$0xff] }
 0x665   :  { %1527 = vmatmul.mubr.msk.f32.vlgmr.msra.gmra.mrb[8].mxu1 %vm1057_vm6, %v1041_v8  ;;  %vm1296_vm6 = vcmask 916480  }
 0x738   :  { %v1528_v17 = vpop.f32.mrb[8].mxu1 }
 0x739   :  { %v1136_v19 = vadd.f32 %v1528_v17, %v1377_v15  ;;  %v1130_v20 = vpop.f32.mrb[9].mxu1 }
 0x73a   :  { %v1131_v21 = vadd.f32 %v1377_v15, %v1130_v20 }
 0x73b   :  { %v1175_v22 = vrot.slane %v1136_v19, %v1152_v16  ;;  %1144 = vst.msk [vmem:[#allocation3 + $0x3] sm:$0x1] %vm1141_vm7, %v1136_v19  ;;  %v1248_v25 = vcombine.high %v1136_v19, %v1136_v19 }
 0x73c   :  { %v1153_v23 = vrot.slane %v1131_v21, %v1152_v16  ;;  %1143 = vst.msk [vmem:[#allocation3] sm:$0x1] %vm1141_vm7, %v1131_v21  ;;  %v1233_v28 = vcombine.high %v1131_v21, %v1131_v21  ;;  %vm1271_vm7 = vmand %vm1941_vm1, %vm1946_vm2 }
 0x73d   :  { %v1183_v24 = vrot.slane %v1175_v22, %v1152_v16  ;;  %v1176_v27 = vcombine.high %v1175_v22, %v1175_v22  ;;  %v1255_v31 = vrot.slane %v1248_v25, %v1152_v16 }
 0x73e   :  { %v1161_v13 = vrot.slane %v1153_v23, %v1152_v16  ;;  %v1154_v18 = vcombine.high %v1153_v23, %v1153_v23  ;;  %v1240_v33 = vrot.slane %v1233_v28, %v1152_v16 }
 0x73f   :  { %v1203_v26 = vcombine.high %v1183_v24, %v1183_v24  ;;  %v1190_v30 = vrot.slane %v1176_v27, %v1152_v16  ;;  %v1262_v34 = vrot.slane %v1255_v31, %v1152_v16  ;;  %v1282_v35 = vcombine.high %v1255_v31, %v1255_v31 }
 0x740   :  { %v1202_v29 = vcombine.high %v1161_v13, %v1161_v13  ;;  %v1168_v32 = vrot.slane %v1154_v18, %v1152_v16  ;;  %v1247_v36 = vrot.slane %v1240_v33, %v1152_v16  ;;  %v1274_v37 = vcombine.high %v1240_v33, %v1240_v33 }
 0x741   :  { %1206 = vrot.lane.b32.xlu1 %v1203_v26, %s1657_s25  ;;  %v1289_v38 = vrot.slane %v1282_v35, %v1152_v16  ;;  %v1221_v41 = vcombine.high %v1190_v30, %v1190_v30  ;;  %v1307_v45 = vcombine.high %v1262_v34, %v1262_v34 }
 0x742   :  { %1204 = vrot.lane.b32.xlu0 %v1202_v29, %s1657_s25  ;;  %v1281_v39 = vrot.slane %v1274_v37, %v1152_v16  ;;  %v1220_v44 = vcombine.high %v1168_v32, %v1168_v32  ;;  %v1306_v46 = vcombine.high %v1247_v36, %v1247_v36 }
 0x743   :  { %v1320_v47 = vcombine.high %v1289_v38, %v1289_v38 }
 0x744   :  { %v1319_v48 = vcombine.high %v1281_v39, %v1281_v39 }
 0x745   :  { %1193 = vrot.lane.b32.xlu1 %v1190_v30, %s1660_s10 }
 0x746   :  { %1191 = vrot.lane.b32.xlu0 %v1168_v32, %s1660_s10 }
 0x749   :  { %1265 = vrot.lane.b32.xlu1 %v1262_v34, %s1661_s7 }
 0x74a   :  { %1263 = vrot.lane.b32.xlu0 %v1247_v36, %s1661_s7 }
 0x74d   :  { %1292 = vrot.lane.b32.xlu1 %v1289_v38, %s1662_s21 }
 0x74e   :  { %1290 = vrot.lane.b32.xlu0 %v1281_v39, %s1662_s21 }
 0x751   :  { %1224 = vrot.lane.b32.xlu1 %v1221_v41, %s1663_s22 }
 0x752   :  { %1222 = vrot.lane.b32.xlu0 %v1220_v44, %s1663_s22 }
 0x755   :  { %1310 = vrot.lane.b32.xlu1 %v1307_v45, %s1658_s19 }
 0x756   :  { %1308 = vrot.lane.b32.xlu0 %v1306_v46, %s1658_s19 }
 0x759   :  { %1323 = vrot.lane.b32.xlu1 %v1320_v47, %s1664_s23 }
 0x75a   :  { %1321 = vrot.lane.b32.xlu0 %v1319_v48, %s1664_s23 }
 0x7b3   :  { %v1207_v51 = vpop.permute.xlu1 %1206 }
 0x7b4   :  { %v1209_v53 = vrot.slane %v1207_v51, 7  ;;  %v1205_v54 = vpop.permute.xlu0 %1204 }
 0x7b5   :  { %v1208_v55 = vrot.slane %v1205_v54, 7 }
 0x7b6   :  { %v1212_v42 = vsel %vm1210_vm12, %v1209_v53, %v1207_v51 }
 0x7b7   :  { %v1194_v40 = vpop.permute.xlu1 %1193  ;;  %v1211_v56 = vsel %vm1210_vm12, %v1208_v55, %v1205_v54  ;;  %vm1327_vm12 = vcmp.ge.s32.totalorder %v1139_v9, 80 }
 0x7b8   :  { %1201 = vst.msk [vmem:[#allocation3 + $0x3] sm:$0x1] %vm1199_vm13, %v1194_v40  ;;  %v1192_v43 = vpop.permute.xlu0 %1191 }
 0x7b9   :  { %1200 = vst.msk [vmem:[#allocation3] sm:$0x1] %vm1199_vm13, %v1192_v43  ;;  %vm1328_vm13 = vcmp.lt.s32.totalorder %v1139_v9, 128 }
 0x7ba   :  { %1219 = vst.msk [vmem:[#allocation3 + $0x3] sm:$0x3] %vm1217_vm14, %v1212_v42  ;;  %1218 = vst.msk [vmem:[#allocation3] sm:$0x3] %vm1217_vm14, %v1211_v56 }
 0x7bb   :  { %v1266_v57 = vpop.permute.xlu1 %1265  ;;  %vm1329_vm14 = vmand %vm1327_vm12, %vm1328_vm13 }
 0x7bc   :  { %v1264_v58 = vpop.permute.xlu0 %1263 }
 0x7bf   :  { %v1293_v61 = vpop.permute.xlu1 %1292 }
 0x7c0   :  { %v1291_v0 = vpop.permute.xlu0 %1290  ;;  %v1295_v3 = vrot.slane %v1293_v61, 7 }
 0x7c1   :  { %v1294_v4 = vrot.slane %v1291_v0, 7 }
 0x7c2   :  { %v1298_v10 = vsel %vm1296_vm6, %v1295_v3, %v1293_v61 }
 0x7c3   :  { %v1225_v7 = vpop.permute.xlu1 %1224  ;;  %v1297_v11 = vsel %vm1296_vm6, %v1294_v4, %v1291_v0 }
 0x7c4   :  { %1232 = vst.msk [vmem:[#allocation3 + $0x4] sm:$0x1] %vm1230_vm5, %v1225_v7  ;;  %v1223_v8 = vpop.permute.xlu0 %1222 }
 0x7c5   :  { %1273 = vst.msk [vmem:[#allocation3 + $0x4] sm:$0x1] %vm1271_vm7, %v1266_v57 }
 0x7c6   :  { %1231 = vst.msk [vmem:[#allocation3 + $0x1] sm:$0x1] %vm1230_vm5, %v1223_v8 }
 0x7c7   :  { %1272 = vst.msk [vmem:[#allocation3 + $0x1] sm:$0x1] %vm1271_vm7, %v1264_v58  ;;  %v1311_v12 = vpop.permute.xlu1 %1310 }
 0x7c8   :  { %1305 = vst.msk [vmem:[#allocation3 + $0x4] sm:$0x3] %vm1303_vm10, %v1298_v10  ;;  %1304 = vst.msk [vmem:[#allocation3 + $0x1] sm:$0x3] %vm1303_vm10, %v1297_v11  ;;  %v1309_v14 = vpop.permute.xlu0 %1308 }
 0x7c9   :  { %1318 = vst.msk [vmem:[#allocation3 + $0x5] sm:$0x1] %vm1316_vm11, %v1311_v12  ;;  %1317 = vst.msk [vmem:[#allocation3 + $0x2] sm:$0x1] %vm1316_vm11, %v1309_v14 }
 0x7cb   :  { %v1324_v15 = vpop.permute.xlu1 %1323 }
 0x7cc   :  { %1331 = vst.msk [vmem:[#allocation3 + $0x5] sm:$0x1] %vm1329_vm14, %v1324_v15  ;;  %v1322_v16 = vpop.permute.xlu0 %1321 }
 0x7cd   :  { %1330 = vst.msk [vmem:[#allocation3 + $0x2] sm:$0x1] %vm1329_vm14, %v1322_v16 }
 0x7ce   :  { %1641 = shalt.err (!%p1638_p4)
}
 0x7cf   :  { %s1642_s26 = scalar_lea.hbm %s2013_s11, 96 }
 0x7d0   :  { %p1643_p5 = scmp.ne.s32.totalorder %s2013_s11, %s1642_s26  ;;  %p1646_p6 = scmp.lt.u32.totalorder %s1642_s26, %s2013_s11 }
 0x7d2   :  { %p1648_p7 = pnand %p1646_p6, %p1643_p5 }
 0x7d4   :  { %1651 = shalt.err (!%p1648_p7)
}
 0x7d5   :  { %s1666_s29 = smov 3  }
 0x7d6   :  { %1343 = dma.vmem_to_hbm [thread:$0]  %s1338_s2, 96, %s2013_s11, [#allocation4], %s1660_s10, %s1660_s10, %s1666_s29  }
 0x7d7   :  { %1652 = dma.done.wait [#allocation4], 96  }
 0x7d8   :  { %1653 = vsyncadd [#allocation4], 4294967200 }
 0x7d9   :  { %1347 = vsyncpa [#allocation4], 1 }

</bundles_post_ra>
